<compile_context>
chip_gen: v7x
topology: tpu7x:2x2x1
jax: 0.10.0
libtpu: 0.0.40
codegen_flags: <defaults>
</compile_context>

<pallas_src>
import functools
import math

import jax
import jax.numpy as jnp
from jax.experimental import pallas as pl
from jax.experimental.pallas import tpu as pltpu

# ~2 MiB output tile: at/above the measured HBM-roofline knee; 2x (double
# buffer) = 4 MiB, comfortably inside every generation's scoped-VMEM default.
_TARGET_TILE_BYTES = 2 * 1024 * 1024


def _rotary_freqs_slab_kernel(scaled_inv_ref, lane_bias_ref, out_ref):
    """Writes one (bm, width) slab tile of packed rotary angles.

    Slab element [s, l] corresponds to sequence position s*R + l // half_dim and
    frequency index l % half_dim:
        out[s, l] = s * (R * inv_freq[l % half_dim])
                    + (l // half_dim) * inv_freq[l % half_dim]
    scaled_inv_ref : (1, width) f32 -> R * inv_freq, tiled along lanes.
    lane_bias_ref  : (1, width) f32 -> (l // half_dim) * inv_freq per lane.
    """
    bm = out_ref.shape[0]
    base = pl.program_id(0) * bm  # global slab-row offset (int32 scalar)

    slab_row = jax.lax.broadcasted_iota(jnp.int32, out_ref.shape, 0) + base
    out_ref[...] = (
        slab_row.astype(jnp.float32) * scaled_inv_ref[...] + lane_bias_ref[...]
    )


@functools.partial(jax.jit, static_argnames=("seqlen", "target_tile_bytes"))
def vision_rotary_embedding(
    inv_freq: jax.Array,
    seqlen: int,
    target_tile_bytes: int = _TARGET_TILE_BYTES,
) -> jax.Array:
    """Pallas equivalent of VisionRotaryEmbedding.forward(seqlen).

    Args:
      inv_freq: (dim//2,) float32 inverse-frequency buffer.
      seqlen:   static sequence length.
      target_tile_bytes: per-tile output byte budget (exposed for testing the
        multi-tile path at small shapes).

    Returns:
      (seqlen, dim//2) float32 array of rotary angles.
    """
    half_dim = inv_freq.shape[0]

    # Pack R sequence positions per slab row so lane width is a multiple of 128.
    R = 128 // math.gcd(half_dim, 128)
    width = R * half_dim  # multiple of 128 by construction

    slab_rows = pl.cdiv(seqlen, R)

    # Row tile chosen by bytes (multiple of 8 sublanes).  Single tile whenever
    # the whole output fits the budget; otherwise pad slab_rows to a multiple of
    # bm so every grid step stores full, unmasked tiles.
    bm_max = max(8, (target_tile_bytes // (4 * width)) // 8 * 8)
    if slab_rows <= bm_max:
        bm = slab_rows
        padded_slab_rows = slab_rows
    else:
        bm = bm_max
        padded_slab_rows = pl.cdiv(slab_rows, bm) * bm
    grid = (padded_slab_rows // bm,)

    pad_seqlen = padded_slab_rows * R

    # Per-lane constants (computed once on host/XLA side, resident in VMEM).
    inv_freq_f32 = inv_freq.astype(jnp.float32)
    inv_tiled = jnp.tile(inv_freq_f32, (R,)).reshape(1, width)
    lane_off = (jnp.arange(width, dtype=jnp.int32) // half_dim).astype(jnp.float32)
    scaled_inv = jnp.float32(R) * inv_tiled                  # R * inv_freq
    lane_bias = lane_off.reshape(1, width) * inv_tiled       # (l//half_dim) * inv_freq

    slab = pl.pallas_call(
        _rotary_freqs_slab_kernel,
        out_shape=jax.ShapeDtypeStruct((padded_slab_rows, width), jnp.float32),
        grid_spec=pltpu.PrefetchScalarGridSpec(
            num_scalar_prefetch=0,
            grid=grid,
            in_specs=[
                pl.BlockSpec((1, width), lambda i: (0, 0)),  # scaled_inv (resident)
                pl.BlockSpec((1, width), lambda i: (0, 0)),  # lane_bias (resident)
            ],
            out_specs=pl.BlockSpec((bm, width), lambda i: (i, 0)),
        ),
        compiler_params=pltpu.CompilerParams(
            dimension_semantics=("parallel",),
        ),
    )(scaled_inv, lane_bias)

    # Free contiguous reshape back to (pad_seqlen, half_dim).
    freqs = slab.reshape(pad_seqlen, half_dim)
    if pad_seqlen != seqlen:
        # TODO(synk): this slice costs a full extra HBM read+write of the
        # tensor; prefer consuming the padded view in the rotary consumer.
        freqs = freqs[:seqlen]
    return freqs


def make_inv_freq(dim: int, theta: float = 10000.0) -> jax.Array:
    """Deterministic parameter init matching the module's __init__."""
    return (1.0 / theta ** (jnp.arange(0, dim, 2, dtype=jnp.float32) / dim)).astype(
        jnp.float32
    )


if __name__ == "__main__":
    # Small shapes consistent with the module: head dim 32 -> dim//2 = 16.
    dim = 32
    theta = 10000.0

    # (PRNGKey unused — inv_freq is a deterministic buffer — created only for
    #  deterministic example construction per instructions.)
    _ = jax.random.PRNGKey(0)

    inv_freq = make_inv_freq(dim, theta)

    ok = True

    def check(freqs, seqlen):
        ref = jnp.outer(jnp.arange(seqlen, dtype=jnp.float32), inv_freq).astype(
            jnp.float32
        )
        good = freqs.shape == (seqlen, dim // 2)
        good &= freqs.dtype == jnp.float32
        good &= bool(jnp.allclose(freqs, ref, atol=1e-6, rtol=1e-6))
        return good

    # Case 1: tiny seqlen (single slab row, single tile, no padding).
    # Case 2: seqlen not a multiple of R, single tile, padded + sliced.
    for seqlen in (8, 300):
        freqs = jax.block_until_ready(vision_rotary_embedding(inv_freq, seqlen))
        ok &= check(freqs, seqlen)

    # Case 3: force the multi-tile grid path (padded last tile, full-lane
    # stores) at a small shape by shrinking the per-tile byte budget.
    seqlen = 300
    freqs = jax.block_until_ready(
        vision_rotary_embedding(inv_freq, seqlen, target_tile_bytes=4096)
    )
    ok &= check(freqs, seqlen)

    assert ok
    print("KERNEL_OK")
</pallas_src>

<mosaic_0001>
module attributes {stable_mosaic.version = 11 : i64} {
  func.func @_rotary_freqs_slab_kernel(%arg0: i32, %arg1: memref<1x128xf32, #tpu.memory_space<vmem>>, %arg2: memref<1x128xf32, #tpu.memory_space<vmem>>, %arg3: memref<1x128xf32, #tpu.memory_space<vmem>>) attributes {dimension_semantics = [#tpu.dimension_semantics<parallel>], iteration_bounds = array<i64: 1>, scalar_prefetch = 0 : i64, scratch_operands = 0 : i64, tpu.core_type = #tpu.core_type<tc>, window_params = [{pipeline_mode = #tpu.pipeline_mode<synchronous>, transform_indices = @transform_0, window_bounds = array<i64: 1, 128>}, {pipeline_mode = #tpu.pipeline_mode<synchronous>, transform_indices = @transform_1, window_bounds = array<i64: 1, 128>}, {transform_indices = @transform_2, window_bounds = array<i64: 1, 128>}]} {
    %c1_i32 = arith.constant 1 : i32
    %0 = arith.muli %arg0, %c1_i32 : i32
    %1 = tpu.iota {dimensions = array<i32: 0>} : vector<1x128xi32>
    %2 = vector.broadcast %0 : i32 to vector<1x128xi32>
    %3 = arith.addi %1, %2 : vector<1x128xi32>
    %4 = arith.sitofp %3 : vector<1x128xi32> to vector<1x128xf32>
    %c0 = arith.constant 0 : index
    %c0_0 = arith.constant 0 : index
    %5 = vector.load %arg1[%c0, %c0_0] : memref<1x128xf32, #tpu.memory_space<vmem>>, vector<1x128xf32>
    %6 = arith.mulf %4, %5 : vector<1x128xf32>
    %c0_1 = arith.constant 0 : index
    %c0_2 = arith.constant 0 : index
    %7 = vector.load %arg2[%c0_1, %c0_2] : memref<1x128xf32, #tpu.memory_space<vmem>>, vector<1x128xf32>
    %8 = arith.addf %6, %7 : vector<1x128xf32>
    %c0_3 = arith.constant 0 : index
    %c0_4 = arith.constant 0 : index
    %9 = vector.load %arg3[%c0_3, %c0_4] : memref<1x128xf32, #tpu.memory_space<vmem>>, vector<1x128xf32>
    tpu.vector_store %arg3[%c0_3, %c0_4], %8 {strides = array<i32>} : memref<1x128xf32, #tpu.memory_space<vmem>>, vector<1x128xf32>,
    return
  }
  func.func @transform_0(%arg0: i32) -> (i32, i32) {
    %c0_i32 = arith.constant 0 : i32
    %c0_i32_0 = arith.constant 0 : i32
    %c0_i32_1 = arith.constant 0 : i32
    return %c0_i32, %c0_i32_0 : i32, i32
  }
  func.func @transform_1(%arg0: i32) -> (i32, i32) {
    %c0_i32 = arith.constant 0 : i32
    %c0_i32_0 = arith.constant 0 : i32
    %c0_i32_1 = arith.constant 0 : i32
    return %c0_i32, %c0_i32_0 : i32, i32
  }
  func.func @transform_2(%arg0: i32) -> (i32, i32) {
    %c0_i32 = arith.constant 0 : i32
    %c0_i32_0 = arith.constant 0 : i32
    return %arg0, %c0_i32 : i32, i32
  }
}

</mosaic_0001>

<bundles_post_ra>
// kernel: tile.8
= control target key start
LH: loop header
LB: loop body
LE: loop exit
PB: predicated region body
PF: predicated region fallthrough
CT: control target
= control target key end

     0   :  { %2 = vsyncpa [#allocation1], 0  ;;  %s44_s6 = smov [#allocation0]   ;;  %s70_s0 = inlined_call_operand.hbm [shape: f32[16], index: 0, kind: input, shape index: {}]   ;;  %s71_s1 = inlined_call_operand.vmem [shape: f32[8,16], index: 1, kind: output, shape index: {}]  }
   0x1   :  { %s9_s7 = sshll.u32 %s44_s6, 4  ;;  %s20_s10 = scalar_lea.hbm %s70_s0, 16  ;;  %s10_s7 = int_to_ptr.vmem [resolvable:$true] %s9_s7 }
   0x2   :  { %p21_p0 = scmp.ne.s32.totalorder %s70_s0, %s20_s10  ;;  %p24_p1 = scmp.lt.u32.totalorder %s20_s10, %s70_s0 }
   0x4   :  { %p26_p2 = pnand %p24_p1, %p21_p0 }
   0x6   :  { %29 = shalt.err (!%p26_p2)
}
   0x7   :  { %s30_s15 = scalar_lea.vmem %s10_s7, 16  ;;  %s34_s16 = scalar_lea.vmem %s10_s7, 32 }
   0x8   :  { %p31_p3 = scmp.ne.s32.totalorder %s10_s7, %s30_s15  ;;  %p35_p4 = scmp.lt.s32.totalorder %s10_s7, %s10_s7 }
   0x9   :  { %p36_p5 = scmp.lt.s32.totalorder %s34_s16, %s30_s15 }
   0xb   :  { %p37_p6 = por %p36_p5, %p35_p4 }
   0xd   :  { %p38_p7 = pnand %p37_p6, %p31_p3 }
   0xf   :  { %41 = shalt.err (!%p38_p7)
}
  0x10   :  { %12 = dma.hbm_to_vmem [thread:$0]  %s70_s0, 16, %s10_s7, [#allocation1]  }
  0x11   :  { %42 = dma.done.wait [#allocation1], 16  }
  0x12   :  { %43 = vsyncadd [#allocation1], 4294967280  ;;  %v16_v0 = vld [vmem:[#allocation0] ss:$0 sm:$0xff] }
  0x13   :  { %17 = vst [vmem:[%s71_s1] sm:$0xff] %v16_v0 }
  0x14   :  { %18 = vsyncpa [#allocation1], 1 }

// kernel: vision_rotary_embedding.1
= control target key start
LH: loop header
LB: loop body
LE: loop exit
PB: predicated region body
PF: predicated region fallthrough
CT: control target
= control target key end

     0   :  { %v11_v0 = vlaneseq  ;;  %s49_s0 = inlined_call_operand.vmem [shape: f32[1,128], index: 0, kind: input, shape index: {}]   ;;  %s50_s1 = inlined_call_operand.vmem [shape: f32[1,128], index: 1, kind: input, shape index: {}]   ;;  %s51_s2 = inlined_call_operand.vmem [shape: f32[1,128], index: 2, kind: output, shape index: {}]  }
   0x1   :  { %v16_v2 = vld [vmem:[%s49_s0] sm:$0x1] }
   0x2   :  { %v12_v1 = vshrl.u32 %v11_v0, 7  ;;  %v18_v4 = vld [vmem:[%s50_s1] sm:$0x1] }
   0x4   :  { %v15_v3 = vcvt.s32.f32 %v12_v1 }
   0x6   :  { %v17_v5 = vmul.f32 %v16_v2, %v15_v3 }
   0x8   :  { %v19_v6 = vadd.f32 %v18_v4, %v17_v5 }
   0xa   :  { %20 = vst [vmem:[%s51_s2] sm:$0x1] %v19_v6 }

</bundles_post_ra>
